<compile_context>
chip_gen: v5e
topology: v5e:2x2
jax: 0.10.0
libtpu: 0.0.40
codegen_flags: <defaults>
</compile_context>

<pallas_src>
import functools

import jax
import jax.numpy as jnp
from jax.experimental import pallas as pl
from jax.experimental.pallas import tpu as pltpu

BN_EPS = 1e-5


# ---------------------------------------------------------------------------
# Pallas kernel: single fused matmul (combined 3-branch 1x1 conv + BN) + bias.
# ---------------------------------------------------------------------------
def _fab_kernel(x_ref, w_ref, b_ref, o_ref):
    # x_ref: (1, Cin, THW)   spatial tile of one batch image (channels-major NCHW)
    # w_ref: (Cout, Cin)     combined weight (BN scales folded in, branches summed)
    # b_ref: (Cout, 1)       combined bias  (sum of per-branch BN shifts)
    # o_ref: (1, Cout, THW)
    x = x_ref[0]                                     # (Cin, THW)
    out = jnp.dot(w_ref[...], x,
                  preferred_element_type=jnp.float32) + b_ref[...]
    o_ref[0] = out.astype(o_ref.dtype)


def _fold_bn(gamma, beta, mean, var):
    scale = gamma / jnp.sqrt(var + BN_EPS)
    shift = beta - mean * scale
    return scale, shift


def fab_block_forward(x_nchw, params, *, tile_hw=2048):
    """FABlock.forward (deploy=False, eval-mode BN), kernel_size=1 configuration."""
    N, Cin, H, W = x_nchw.shape
    Cout = params["w_square"].shape[0]
    HW = H * W

    # ---- parameter prep (tiny glue, plain JAX) ----
    # FlipConv semantics: weight is flipped before the conv (k=1 -> only channel
    # axis flips matter; see TODO at top).
    w_sq = params["w_square"][:, :, 0, 0]            # (Cout, Cin)
    w_ve = params["w_ver"][:, ::-1, 0, 0]            # torch.fliplr -> flip dim 1 (Cin)
    w_ho = params["w_hor"][::-1, :, 0, 0]            # torch.flipud -> flip dim 0 (Cout)

    s_sq, b_sq = _fold_bn(params["sq_gamma"], params["sq_beta"],
                          params["sq_mean"], params["sq_var"])
    s_ve, b_ve = _fold_bn(params["v_gamma"], params["v_beta"],
                          params["v_mean"], params["v_var"])
    s_ho, b_ho = _fold_bn(params["h_gamma"], params["h_beta"],
                          params["h_mean"], params["h_var"])

    # Exact algebraic fusion of the three branches (all linear):
    #   sum_b BN_b(conv_b(x)) = (sum_b scale_b * W_b) . x + sum_b shift_b
    w_comb = (s_sq[:, None] * w_sq
              + s_ve[:, None] * w_ve
              + s_ho[:, None] * w_ho).astype(jnp.float32)          # (Cout, Cin)
    shift = (b_sq + b_ve + b_ho).astype(jnp.float32)[:, None]      # (Cout, 1)

    # ---- input layout: free reshape, no transpose, no pad ----
    x3 = x_nchw.reshape(N, Cin, HW)                  # (N, Cin, H*W)

    # Spatial tile: full extent if small, else a multiple of 128 (lane-dense).
    thw = HW if HW <= tile_hw else tile_hw
    grid = (N, pl.cdiv(HW, thw))

    out3 = pl.pallas_call(
        _fab_kernel,
        out_shape=jax.ShapeDtypeStruct((N, Cout, HW), x_nchw.dtype),
        grid=grid,
        in_specs=[
            pl.BlockSpec((1, Cin, thw), lambda n, j: (n, 0, j)),   # x spatial tile
            pl.BlockSpec((Cout, Cin), lambda n, j: (0, 0)),        # combined weight
            pl.BlockSpec((Cout, 1), lambda n, j: (0, 0)),          # combined bias
        ],
        out_specs=pl.BlockSpec((1, Cout, thw), lambda n, j: (n, 0, j)),
        compiler_params=pltpu.CompilerParams(
            dimension_semantics=("parallel", "parallel")),
    )(x3, w_comb, shift)

    return out3.reshape(N, Cout, H, W)               # still NCHW, free reshape


# ---------------------------------------------------------------------------
# Pure-JAX reference (mirrors the PyTorch forward, eval-mode BN) for checking.
# ---------------------------------------------------------------------------
def fab_block_reference(x_nchw, params):
    def conv1x1(x, w_oi):  # w_oi: (Cout, Cin)
        return jnp.einsum("nchw,oc->nohw", x, w_oi)

    def bn(y, gamma, beta, mean, var):
        g = gamma[None, :, None, None]
        b = beta[None, :, None, None]
        m = mean[None, :, None, None]
        v = var[None, :, None, None]
        return g * (y - m) / jnp.sqrt(v + BN_EPS) + b

    sq = bn(conv1x1(x_nchw, params["w_square"][:, :, 0, 0]),
            params["sq_gamma"], params["sq_beta"],
            params["sq_mean"], params["sq_var"])
    ve = bn(conv1x1(x_nchw, params["w_ver"][:, ::-1, 0, 0]),
            params["v_gamma"], params["v_beta"],
            params["v_mean"], params["v_var"])
    ho = bn(conv1x1(x_nchw, params["w_hor"][::-1, :, 0, 0]),
            params["h_gamma"], params["h_beta"],
            params["h_mean"], params["h_var"])
    return sq + ve + ho


if __name__ == "__main__":
    key = jax.random.PRNGKey(0)
    N, Cin, H, W = 2, 4, 16, 16
    Cout = 8
    k = 1  # only kernel_size for which the reference module's branch shapes match

    ks = jax.random.split(key, 16)
    x = jax.random.normal(ks[0], (N, Cin, H, W), jnp.float32)

    params = {
        # conv weights (PyTorch OIHW conventions)
        "w_square": 0.1 * jax.random.normal(ks[1], (Cout, Cin, k, k), jnp.float32),
        "w_ver":    0.1 * jax.random.normal(ks[2], (Cout, Cin, k, 1), jnp.float32),
        "w_hor":    0.1 * jax.random.normal(ks[3], (Cout, Cin, 1, k), jnp.float32),
        # BatchNorm2d (eval-mode running stats; deterministic, non-trivial values)
        "sq_gamma": 1.0 + 0.1 * jax.random.normal(ks[4], (Cout,), jnp.float32),
        "sq_beta":  0.1 * jax.random.normal(ks[5], (Cout,), jnp.float32),
        "sq_mean":  0.1 * jax.random.normal(ks[6], (Cout,), jnp.float32),
        "sq_var":   0.5 + jnp.abs(jax.random.normal(ks[7], (Cout,), jnp.float32)),
        "v_gamma":  1.0 + 0.1 * jax.random.normal(ks[8], (Cout,), jnp.float32),
        "v_beta":   0.1 * jax.random.normal(ks[9], (Cout,), jnp.float32),
        "v_mean":   0.1 * jax.random.normal(ks[10], (Cout,), jnp.float32),
        "v_var":    0.5 + jnp.abs(jax.random.normal(ks[11], (Cout,), jnp.float32)),
        "h_gamma":  1.0 + 0.1 * jax.random.normal(ks[12], (Cout,), jnp.float32),
        "h_beta":   0.1 * jax.random.normal(ks[13], (Cout,), jnp.float32),
        "h_mean":   0.1 * jax.random.normal(ks[14], (Cout,), jnp.float32),
        "h_var":    0.5 + jnp.abs(jax.random.normal(ks[15], (Cout,), jnp.float32)),
    }

    run = jax.jit(functools.partial(fab_block_forward, tile_hw=2048))
    out = run(x, params)
    out = jax.block_until_ready(out)

    ref = jax.block_until_ready(fab_block_reference(x, params))
    assert out.shape == (N, Cout, H, W), out.shape
    assert jnp.allclose(out, ref, rtol=1e-4, atol=1e-4), float(
        jnp.max(jnp.abs(out - ref)))

    print("KERNEL_OK")
</pallas_src>

<mosaic_0001>
module attributes {stable_mosaic.version = 11 : i64} {
  func.func @_fab_kernel(%arg0: i32, %arg1: i32, %arg2: memref<1x4x256xf32, #tpu.memory_space<vmem>>, %arg3: memref<8x4xf32, #tpu.memory_space<vmem>>, %arg4: memref<8x1xf32, #tpu.memory_space<vmem>>, %arg5: memref<1x8x256xf32, #tpu.memory_space<vmem>>) attributes {dimension_semantics = [#tpu.dimension_semantics<parallel>, #tpu.dimension_semantics<parallel>], iteration_bounds = array<i64: 2, 1>, scalar_prefetch = 0 : i64, scratch_operands = 0 : i64, tpu.core_type = #tpu.core_type<tc>, window_params = [{transform_indices = @transform_0, window_bounds = array<i64: 1, 4, 256>}, {pipeline_mode = #tpu.pipeline_mode<synchronous>, transform_indices = @transform_1, window_bounds = array<i64: 8, 4>}, {pipeline_mode = #tpu.pipeline_mode<synchronous>, transform_indices = @transform_2, window_bounds = array<i64: 8, 1>}, {transform_indices = @transform_3, window_bounds = array<i64: 1, 8, 256>}]} {
    %c0 = arith.constant 0 : index
    %c0_0 = arith.constant 0 : index
    %c0_1 = arith.constant 0 : index
    %0 = vector.load %arg2[%c0, %c0_0, %c0_1] : memref<1x4x256xf32, #tpu.memory_space<vmem>>, vector<1x4x256xf32>
    %1 = vector.shape_cast %0 : vector<1x4x256xf32> to vector<4x256xf32>
    %c0_2 = arith.constant 0 : index
    %c0_3 = arith.constant 0 : index
    %2 = vector.load %arg3[%c0_2, %c0_3] : memref<8x4xf32, #tpu.memory_space<vmem>>, vector<8x4xf32>
    %cst = arith.constant dense<0.000000e+00> : vector<8x256xf32>
    %3 = tpu.matmul %2, %1, %cst {dimension_numbers = #tpu.dot_dimension_numbers<[1], [0], [0], [1], [0, 0, 1, 1], [], []>} : vector<8x4xf32>, vector<4x256xf32>, vector<8x256xf32> -> vector<8x256xf32>
    %c0_4 = arith.constant 0 : index
    %c0_5 = arith.constant 0 : index
    %4 = vector.load %arg4[%c0_4, %c0_5] : memref<8x1xf32, #tpu.memory_space<vmem>>, vector<8x1xf32>
    %5 = vector.broadcast %4 : vector<8x1xf32> to vector<8x256xf32>
    %6 = arith.addf %3, %5 : vector<8x256xf32>
    %c0_6 = arith.constant 0 : index
    %c0_7 = arith.constant 0 : index
    %c0_8 = arith.constant 0 : index
    %7 = vector.load %arg5[%c0_6, %c0_7, %c0_8] : memref<1x8x256xf32, #tpu.memory_space<vmem>>, vector<1x8x256xf32>
    %8 = vector.shape_cast %7 : vector<1x8x256xf32> to vector<8x256xf32>
    %9 = vector.shape_cast %6 : vector<8x256xf32> to vector<1x8x256xf32>
    tpu.vector_store %arg5[%c0_6, %c0_7, %c0_8], %9 {strides = array<i32>} : memref<1x8x256xf32, #tpu.memory_space<vmem>>, vector<1x8x256xf32>,
    return
  }
  func.func @transform_0(%arg0: i32, %arg1: i32) -> (i32, i32, i32) {
    %c0_i32 = arith.constant 0 : i32
    %c0_i32_0 = arith.constant 0 : i32
    return %arg0, %c0_i32, %arg1 : i32, i32, i32
  }
  func.func @transform_1(%arg0: i32, %arg1: i32) -> (i32, i32) {
    %c0_i32 = arith.constant 0 : i32
    %c0_i32_0 = arith.constant 0 : i32
    %c0_i32_1 = arith.constant 0 : i32
    return %c0_i32, %c0_i32_0 : i32, i32
  }
  func.func @transform_2(%arg0: i32, %arg1: i32) -> (i32, i32) {
    %c0_i32 = arith.constant 0 : i32
    %c0_i32_0 = arith.constant 0 : i32
    %c0_i32_1 = arith.constant 0 : i32
    return %c0_i32, %c0_i32_0 : i32, i32
  }
  func.func @transform_3(%arg0: i32, %arg1: i32) -> (i32, i32, i32) {
    %c0_i32 = arith.constant 0 : i32
    %c0_i32_0 = arith.constant 0 : i32
    return %arg0, %c0_i32, %arg1 : i32, i32, i32
  }
}

</mosaic_0001>

<bundles_post_ra>
// kernel: fab_block_forward.1
= control target key start
LH: loop header
LB: loop body
LE: loop exit
PB: predicated region body
PF: predicated region fallthrough
CT: control target
= control target key end

     0   :  { %s448_s12 = smov 0   ;;  %s450_s13 = smov 0   ;;  %s487_s0 = inlined_call_operand.vmem [shape: f32[2,4,256], index: 0, kind: input, shape index: {}]   ;;  %s488_s1 = inlined_call_operand.vmem [shape: f32[8,4], index: 1, kind: input, shape index: {}]   ;;  %s489_s2 = inlined_call_operand.vmem [shape: f32[8,1], index: 2, kind: input, shape index: {}]   ;;  %s490_s3 = inlined_call_operand.vmem [shape: f32[2,8,256], index: 3, kind: output, shape index: {}]  }
   0x1   :  { %s452_s14 = smov 0  }
   0x2 LB: > { %s25_s15 = sadd.s32 1, %s421_s13  ;;  %p364_p0 = scmp.ge.s32.totalorder %s425_s14, 1  ;;  %s425_s14 = sphi %s452_s14, %s13_s14   ;;  %s421_s13 = sphi %s450_s13, %s492_s13   ;;  %s417_s12 = sphi %s448_s12, %s491_s12  }
   0x3   : > { %p27_p1 = scmp.ge.s32.totalorder %s25_s15, 2  ;;  %p158_p2 = scmp.lt.s32.totalorder %s425_s14, 3 }
   0x5   : > { %s494_s15 = smov (%p27_p1, %s25_s15), 0  ;;  %p159_p3 = pnand %p364_p0, %p158_p2 }
   0x6   : > { %p191_p4 = scmp.lt.s32.totalorder (!%p159_p3), %s417_s12, 1 }
   0x7   : > { %162 = sbr.rel (%p159_p3) target bundleno = 155 (0x9b), region = 32 }
   0xc   : > { %v212_v0 = vld [vmem:[%s489_s2] sm:$0xff]  ;;  %v427_v1 = vmov 0   ;;  %s496_s12 = smov (!%p191_p4, %s417_s12), 1  ;;  %vm226_vm0 = vcmask 1043456   ;;  %vm222_vm1 = vcmask 31744  }
   0xd   : > { %402 = vset.pattern.permute.xlu0 %v427_v1  ;;  %s375_s18 = sshll.u32 %s496_s12, 3  ;;  %v211_v3 = vld [vmem:[%s488_s1] sm:$0xff]  ;;  %s376_s24 = sshll.u32 %s496_s12, 4 }
   0xe   : > { %215 = vperm.xlu0 %402, %v212_v0   ;;  %s198_s21 = scalar_lea.vmem %s487_s0, %s375_s18  ;;  %s208_s27 = scalar_lea.vmem %s490_s3, %s376_s24 }
   0xf   : > { %v210_v2 = vld [vmem:[%s198_s21] sm:$0xff] }
  0x10   : > { %219 = vst [vmem:[#allocation1] ss:$2 sm:$0xff] %v210_v2 }
  0x17   : > { %v220_v4 = vld.sshfl [vmem:[#allocation1] sm:$0xff pattern:$0x75316420]  ;;  %v221_v5 = vld.sshfl [vmem:[#allocation1 + $0x8] sm:$0xff pattern:$0x75316420] }
  0x18   : > { %369 = vmatpush.msk.msra.mxu0 %vm226_vm0, %v220_v4  ;;  %371 = vmatpush.msk.msra.mxu1 %vm226_vm0, %v221_v5 }
  0x19   : > { %370 = vmatmul.msk.f32.vlgmr.msra.gmra.mxu0 %vm222_vm1, %v211_v3  ;;  %372 = vmatmul.msk.f32.vlgmr.msra.gmra.mxu1 %vm222_vm1, %v211_v3 }
  0x80   : > { %v216_v6 = vpop.permute.xlu0 %215 }
  0x96   : > { %v248_v7 = vpop.f32.mrf.mxu0  ;;  %v268_v8 = vpop.f32.mrf.mxu1 }
  0x97   : > { %v249_v9 = vadd.f32 %v248_v7, %v216_v6  ;;  %v269_v10 = vadd.f32 %v268_v8, %v216_v6 }
  0x99   : > { %271 = vst [vmem:[%s208_s27] sm:$0xff] %v249_v9 }
  0x9a   : > { %272 = vst [vmem:[%s208_s27 + $0x8] sm:$0xff] %v269_v10 }
  0x9b PF: > { %s13_s14 = sadd.s32 1, %s425_s14   ;;  %s491_s12 = smov %s421_s13 }
  0x9c   : > { %p10_p5 = scmp.ge.s32.totalorder %s13_s14, 4   ;;  %s492_s13 = smov %s494_s15 }
  0x9e   :  { %12 = sbr.rel (!%p10_p5) target bundleno = 2 (0x2), region = 62 }

</bundles_post_ra>
